<compile_context>
chip_gen: v5e
topology: v5e:2x2
jax: 0.10.0
libtpu: 0.0.40
codegen_flags: <defaults>
</compile_context>

<pallas_src>
import math

import jax
import jax.numpy as jnp
from jax import lax
from jax.experimental import pallas as pl
from jax.experimental.pallas import tpu as pltpu

_MIB = 1024 * 1024


# ---------------------------------------------------------------------------
# helpers
# ---------------------------------------------------------------------------
def _round_up(x, m):
    return ((x + m - 1) // m) * m


def _pick_tile(dim, preferred, granularity):
    """Largest tile <= preferred that is a multiple of `granularity` and evenly
    divides `dim`; falls back to the full dimension.  Only used for model-sized
    axes (d_model / 3*d_model), never for the token axis."""
    if dim <= preferred:
        return dim
    t = (preferred // granularity) * granularity
    while t >= granularity:
        if dim % t == 0:
            return t
        t -= granularity
    return dim


def _vmem_cap_bytes():
    # Generation-aware cap: leave ~24 MiB headroom for Mosaic internal scratch.
    # v5e/v6e have 128 MiB physical VMEM (-> ~100 MiB cap), v7x has 64 MiB
    # (-> ~40 MiB cap).
    try:
        phys = int(pltpu.get_tpu_info().vmem_capacity_bytes)
    except Exception:
        phys = 64 * _MIB  # conservative default (v7x)
    return max(32 * _MIB, min(phys - 24 * _MIB, 100 * _MIB))


def _vmem_limit_bytes(needed):
    return int(min(max(32 * _MIB, 2 * int(needed)), _vmem_cap_bytes()))


# ---------------------------------------------------------------------------
# Kernel 1: tiled QKV linear projection (no bias):  y = x @ W^T
# ---------------------------------------------------------------------------
def _make_matmul_kernel(mxu_dtype, with_acc):
    if with_acc:
        def kernel(x_ref, w_ref, o_ref, acc_ref):
            @pl.when(pl.program_id(2) == 0)
            def _():
                acc_ref[...] = jnp.zeros_like(acc_ref)

            acc_ref[...] += jnp.dot(
                x_ref[...].astype(mxu_dtype),
                w_ref[...].astype(mxu_dtype),
                preferred_element_type=jnp.float32,
            )

            @pl.when(pl.program_id(2) == pl.num_programs(2) - 1)
            def _():
                o_ref[...] = acc_ref[...].astype(o_ref.dtype)
    else:
        def kernel(x_ref, w_ref, o_ref):
            o_ref[...] = jnp.dot(
                x_ref[...].astype(mxu_dtype),
                w_ref[...].astype(mxu_dtype),
                preferred_element_type=jnp.float32,
            ).astype(o_ref.dtype)
    return kernel


def qkv_projection(x2d, w_t, *, out_dtype=None, mxu_dtype=jnp.bfloat16,
                   tm_pref=512, tn_pref=512, tk_pref=1024):
    """y = x2d @ w_t with x2d (M, K) = (B*L, D) and w_t (K, N) = (D, 3D)."""
    M, K = x2d.shape
    K2, N = w_t.shape
    assert K == K2
    out_dtype = out_dtype if out_dtype is not None else x2d.dtype

    x_item = x2d.dtype.itemsize
    w_item = w_t.dtype.itemsize
    o_item = jnp.dtype(out_dtype).itemsize

    # dtype-dependent sublane granularity for the token (M) tile:
    # f32 -> 8, bf16 -> 16, int8/fp8 -> 32 (consider both input and output).
    sub = max(8, 32 // x_item, 32 // o_item)

    if M <= tm_pref:
        tm = M if M % sub == 0 else _round_up(M, sub)
    else:
        tm = tm_pref
    grid_m = pl.cdiv(M, tm)  # partial final M tile: reads padded, writes masked

    tn = _pick_tile(N, tn_pref, 128)
    tk = K if K <= tk_pref else _pick_tile(K, tk_pref, 128)

    needed = 2 * tm * tk * x_item + 2 * tk * tn * w_item + 2 * tm * tn * o_item

    if tk == K:
        # Single reduction step: drop the K grid axis and the accumulator.
        kernel = _make_matmul_kernel(mxu_dtype, with_acc=False)
        grid = (grid_m, N // tn)
        in_specs = [pl.BlockSpec((tm, K), lambda i, j: (i, 0)),
                    pl.BlockSpec((K, tn), lambda i, j: (0, j))]
        out_specs = pl.BlockSpec((tm, tn), lambda i, j: (i, j))
        scratch = []
        dims = ("parallel", "parallel")
    else:
        kernel = _make_matmul_kernel(mxu_dtype, with_acc=True)
        grid = (grid_m, N // tn, K // tk)
        in_specs = [pl.BlockSpec((tm, tk), lambda i, j, k: (i, k)),
                    pl.BlockSpec((tk, tn), lambda i, j, k: (k, j))]
        out_specs = pl.BlockSpec((tm, tn), lambda i, j, k: (i, j))
        scratch = [pltpu.VMEM((tm, tn), jnp.float32)]
        dims = ("parallel", "parallel", "arbitrary")
        needed += tm * tn * 4

    return pl.pallas_call(
        kernel,
        out_shape=jax.ShapeDtypeStruct((M, N), out_dtype),
        grid_spec=pltpu.PrefetchScalarGridSpec(
            num_scalar_prefetch=0,
            grid=grid,
            in_specs=in_specs,
            out_specs=out_specs,
            scratch_shapes=scratch,
        ),
        compiler_params=pltpu.CompilerParams(
            dimension_semantics=dims,
            vmem_limit_bytes=_vmem_limit_bytes(needed),
        ),
        cost_estimate=pl.CostEstimate(
            flops=2 * M * N * K,
            transcendentals=0,
            bytes_accessed=int(M * K * x_item + K * N * w_item + M * N * o_item),
        ),
    )(x2d, w_t)


# ---------------------------------------------------------------------------
# Kernel 2: fused multi-head attention over a qkv slab with columns grouped
#           as [Q_all_heads | K_all_heads | V_all_heads].
# ---------------------------------------------------------------------------
def _head_attention(q, k, v, inv_scale, mxu_dtype, out_dtype):
    """One head: softmax((q k^T) / scale) @ v with f32 statistics/accumulation."""
    q = (q * inv_scale).astype(mxu_dtype)          # pre-scale Q: O(L*dh)
    # Q @ K^T via dot_general contracting the last dims (no explicit k.T).
    s = lax.dot_general(q, k.astype(mxu_dtype), (((1,), (1,)), ((), ())),
                        preferred_element_type=jnp.float32)
    m = jnp.max(s, axis=-1, keepdims=True)
    p = jnp.exp(s - m)
    denom = jnp.sum(p, axis=-1, keepdims=True)
    # TODO(synk): training-mode dropout on p via pltpu.prng_random_bits.
    out_h = jnp.dot(p.astype(mxu_dtype), v.astype(mxu_dtype),
                    preferred_element_type=jnp.float32)
    # Deferred softmax normalization: one exact EUP reciprocal + O(L*dh) mul.
    out_h = out_h * pl.reciprocal(denom, approx=False)
    return out_h.astype(out_dtype)


def _make_attn_kernel_single(nheads, dim_head, scale, mxu_dtype):
    D = nheads * dim_head
    inv_scale = 1.0 / float(scale)

    def kernel(qkv_ref, o_ref):
        # Slice the ref per head (no (L, 3D) slab materialization) and store
        # each head's output directly (no concatenate).
        for h in range(nheads):
            lo, hi = h * dim_head, (h + 1) * dim_head
            q = qkv_ref[0, :, lo:hi]
            k = qkv_ref[0, :, D + lo:D + hi]
            v = qkv_ref[0, :, 2 * D + lo:2 * D + hi]
            o_ref[0, :, lo:hi] = _head_attention(q, k, v, inv_scale,
                                                 mxu_dtype, o_ref.dtype)

    return kernel


def _make_attn_kernel_qtiled(nheads, dim_head, scale, mxu_dtype):
    D = nheads * dim_head
    inv_scale = 1.0 / float(scale)

    def kernel(q_ref, kv_ref, o_ref):
        for h in range(nheads):
            lo, hi = h * dim_head, (h + 1) * dim_head
            q = q_ref[0, :, lo:hi]
            k = kv_ref[0, :, D + lo:D + hi]
            v = kv_ref[0, :, 2 * D + lo:2 * D + hi]
            o_ref[0, :, lo:hi] = _head_attention(q, k, v, inv_scale,
                                                 mxu_dtype, o_ref.dtype)

    return kernel


def attention(qkv, nheads, dim_head, scale, *, out_dtype=None,
              mxu_dtype=jnp.bfloat16):
    # qkv: (B, L, 3D), columns grouped [Q_all | K_all | V_all]
    B, L, D3 = qkv.shape
    D = D3 // 3
    assert D == nheads * dim_head
    out_dtype = out_dtype if out_dtype is not None else qkv.dtype
    in_item = qkv.dtype.itemsize
    out_item = jnp.dtype(out_dtype).itemsize

    # Second "parallel" grid axis over q-row tiles when L allows it: feeds both
    # v7x TensorCores even for B=1 and shrinks the per-step VMEM footprint.
    # TODO(synk): pad+mask L (e.g. ViT's 197) so this path engages there too.
    tq = None
    for cand in (256, 128):
        if L % cand == 0 and L // cand >= 2:
            tq = cand
            break

    if tq is None:
        kernel = _make_attn_kernel_single(nheads, dim_head, scale, mxu_dtype)
        grid = (B,)
        in_specs = [pl.BlockSpec((1, L, D3), lambda b: (b, 0, 0))]
        out_specs = pl.BlockSpec((1, L, D), lambda b: (b, 0, 0))
        operands = (qkv,)
        dims = ("parallel",)
        rows = L
        needed = 2 * L * D3 * in_item + 2 * L * D * out_item
    else:
        kernel = _make_attn_kernel_qtiled(nheads, dim_head, scale, mxu_dtype)
        grid = (B, L // tq)
        in_specs = [pl.BlockSpec((1, tq, D3), lambda b, qi: (b, qi, 0)),
                    pl.BlockSpec((1, L, D3), lambda b, qi: (b, 0, 0))]
        out_specs = pl.BlockSpec((1, tq, D), lambda b, qi: (b, qi, 0))
        operands = (qkv, qkv)
        dims = ("parallel", "parallel")
        rows = tq
        needed = (2 * tq * D3 * in_item + 2 * L * D3 * in_item
                  + 2 * tq * D * out_item)

    # Honest VMEM estimate: include the (rows, L) f32 scores + exp temporaries
    # and the per-head f32 output tile.
    needed += 3 * rows * L * 4 + 2 * rows * dim_head * 4

    return pl.pallas_call(
        kernel,
        out_shape=jax.ShapeDtypeStruct((B, L, D), out_dtype),
        grid=grid,
        in_specs=in_specs,
        out_specs=out_specs,
        compiler_params=pltpu.CompilerParams(
            dimension_semantics=dims,
            vmem_limit_bytes=_vmem_limit_bytes(needed),
        ),
        cost_estimate=pl.CostEstimate(
            flops=4 * B * nheads * L * L * dim_head,
            transcendentals=B * nheads * L * L,
            bytes_accessed=int(B * L * D3 * in_item + B * L * D * out_item),
        ),
    )(*operands)


# ---------------------------------------------------------------------------
# Module wrapper (mirrors the PyTorch SelfAttention forward, eval mode)
# ---------------------------------------------------------------------------
class SelfAttentionPallas:
    def __init__(self, d_model, nheads, key, dropout=0.1,
                 compute_dtype=jnp.bfloat16):
        assert d_model % nheads == 0
        self.d_model = d_model
        self.nheads = nheads
        self.dim_head = d_model // nheads
        self.scale = math.sqrt(float(self.dim_head))
        self.dropout = dropout              # identity in eval mode
        self.compute_dtype = compute_dtype  # set to jnp.float32 for exact parity

        # nn.Linear(d_model, 3*d_model, bias=False): weight (3D, D), rows
        # interleaved per head as [Q_h | K_h | V_h].
        self.w_qkv = (jax.random.normal(key, (3 * d_model, d_model),
                                        dtype=jnp.float32) * 0.02)
        # Regroup rows ONCE at init to [Q_all_heads | K_all_heads | V_all_heads]
        # and transpose, so the kernels read contiguous Q/K/V slabs at offsets
        # 0 / D / 2D; stored in the compute dtype (bf16) to halve weight HBM
        # traffic and feed the MXU at its bf16 rate.
        w_grouped = self.w_qkv.reshape(nheads, 3, self.dim_head, d_model)
        w_grouped = jnp.transpose(w_grouped, (1, 0, 2, 3)).reshape(3 * d_model, d_model)
        self.w_qkv_t = jnp.asarray(w_grouped.T, dtype=compute_dtype)

    def __call__(self, inputs, attn_mask=None):
        # inputs: (B, L, d_model)
        assert attn_mask is None  # TODO(synk): additive attn_mask not plumbed into kernel
        B, L, D = inputs.shape
        assert D == self.d_model

        # --- QKV projection (tiled Pallas MXU matmul, bf16 operands/output,
        #     f32 accumulation).  bf16 qkv halves the HBM round trip to the
        #     attention kernel, which re-accumulates in f32. ---
        x2d = inputs.reshape(B * L, D)
        qkv = qkv_projection(x2d, self.w_qkv_t,
                             out_dtype=self.compute_dtype,
                             mxu_dtype=self.compute_dtype)
        qkv = qkv.reshape(B, L, 3 * D)   # layout-preserving, no transpose

        # --- fused attention; output is already merged-head (B, L, D) in the
        #     input dtype ---
        return attention(qkv, self.nheads, self.dim_head, self.scale,
                         out_dtype=inputs.dtype, mxu_dtype=self.compute_dtype)


# ---------------------------------------------------------------------------
# Pure-JAX reference (matches the PyTorch forward in eval mode, f32 throughout)
# ---------------------------------------------------------------------------
def reference(inputs, w_qkv, nheads):
    B, L, D = inputs.shape
    dh = D // nheads
    qkv = inputs @ w_qkv.T
    qkv = qkv.reshape(B, L, nheads, 3 * dh).transpose(0, 2, 1, 3)
    q, k, v = qkv[..., :dh], qkv[..., dh:2 * dh], qkv[..., 2 * dh:]
    s = jnp.einsum("bhqd,bhkd->bhqk", q, k) / jnp.sqrt(jnp.float32(dh))
    p = jax.nn.softmax(s, axis=-1)
    o = jnp.einsum("bhqk,bhkd->bhqd", p, v)
    return o.transpose(0, 2, 1, 3).reshape(B, L, D)


if __name__ == "__main__":
    key = jax.random.PRNGKey(0)
    k_w, k_x, k_w2, k_x2 = jax.random.split(key, 4)

    # --- primary shape (consistent with the module: batch=2, seq=8, hidden=32) ---
    B, L, d_model, nheads = 2, 8, 32, 4
    model = SelfAttentionPallas(d_model, nheads, k_w)
    x = jax.random.normal(k_x, (B, L, d_model), dtype=jnp.float32)
    out = jax.block_until_ready(model(x))
    ref = reference(x, model.w_qkv, nheads)
    assert out.shape == (B, L, d_model)
    assert out.dtype == x.dtype
    # tolerance accounts for the bf16 compute path (qkv + MXU operands);
    # compute_dtype=jnp.float32 matches the reference to ~1e-5.
    assert jnp.allclose(out, ref, atol=2e-2, rtol=2e-2), \
        float(jnp.max(jnp.abs(out - ref)))

    # --- second shape: exercises the q-tiled (B, L//tq) attention grid path ---
    B2, L2, d_model2, nheads2 = 1, 256, 128, 2
    model2 = SelfAttentionPallas(d_model2, nheads2, k_w2)
    x2 = jax.random.normal(k_x2, (B2, L2, d_model2), dtype=jnp.float32)
    out2 = jax.block_until_ready(model2(x2))
    ref2 = reference(x2, model2.w_qkv, nheads2)
    assert out2.shape == (B2, L2, d_model2)
    assert jnp.allclose(out2, ref2, atol=2e-2, rtol=2e-2), \
        float(jnp.max(jnp.abs(out2 - ref2)))

    print("KERNEL_OK")
</pallas_src>

<mosaic_0001>
module attributes {stable_mosaic.version = 11 : i64} {
  func.func @kernel(%arg0: i32, %arg1: i32, %arg2: memref<16x32xf32, #tpu.memory_space<vmem>>, %arg3: memref<32x96xbf16, #tpu.memory_space<vmem>>, %arg4: memref<16x96xbf16, #tpu.memory_space<vmem>>) attributes {dimension_semantics = [#tpu.dimension_semantics<parallel>, #tpu.dimension_semantics<parallel>], iteration_bounds = array<i64: 1, 1>, scalar_prefetch = 0 : i64, scratch_operands = 0 : i64, tpu.core_type = #tpu.core_type<tc>, window_params = [{transform_indices = @transform_0, window_bounds = array<i64: 16, 32>}, {transform_indices = @transform_1, window_bounds = array<i64: 32, 96>}, {transform_indices = @transform_2, window_bounds = array<i64: 16, 96>}]} {
    %c0 = arith.constant 0 : index
    %c0_0 = arith.constant 0 : index
    %0 = vector.load %arg2[%c0, %c0_0] : memref<16x32xf32, #tpu.memory_space<vmem>>, vector<16x32xf32>
    %1 = arith.truncf %0 : vector<16x32xf32> to vector<16x32xbf16>
    %c0_1 = arith.constant 0 : index
    %c0_2 = arith.constant 0 : index
    %2 = vector.load %arg3[%c0_1, %c0_2] : memref<32x96xbf16, #tpu.memory_space<vmem>>, vector<32x96xbf16>
    %cst = arith.constant dense<0.000000e+00> : vector<16x96xf32>
    %3 = tpu.matmul %1, %2, %cst {dimension_numbers = #tpu.dot_dimension_numbers<[1], [0], [0], [1], [0, 0, 1, 1], [], []>} : vector<16x32xbf16>, vector<32x96xbf16>, vector<16x96xf32> -> vector<16x96xf32>
    %4 = arith.truncf %3 : vector<16x96xf32> to vector<16x96xbf16>
    %c0_3 = arith.constant 0 : index
    %c0_4 = arith.constant 0 : index
    %5 = vector.load %arg4[%c0_3, %c0_4] : memref<16x96xbf16, #tpu.memory_space<vmem>>, vector<16x96xbf16>
    tpu.vector_store %arg4[%c0_3, %c0_4], %4 {strides = array<i32>} : memref<16x96xbf16, #tpu.memory_space<vmem>>, vector<16x96xbf16>,
    return
  }
  func.func @transform_0(%arg0: i32, %arg1: i32) -> (i32, i32) {
    %c0_i32 = arith.constant 0 : i32
    %c0_i32_0 = arith.constant 0 : i32
    return %arg0, %c0_i32 : i32, i32
  }
  func.func @transform_1(%arg0: i32, %arg1: i32) -> (i32, i32) {
    %c0_i32 = arith.constant 0 : i32
    %c0_i32_0 = arith.constant 0 : i32
    return %c0_i32, %arg1 : i32, i32
  }
  func.func @transform_2(%arg0: i32, %arg1: i32) -> (i32, i32) {
    %c0_i32 = arith.constant 0 : i32
    return %arg0, %arg1 : i32, i32
  }
}

</mosaic_0001>

<bundles_post_ra>
// kernel: tpu_custom_call.1
= control target key start
LH: loop header
LB: loop body
LE: loop exit
PB: predicated region body
PF: predicated region fallthrough
CT: control target
= control target key end

     0   :  { %7 = vsyncpa [#allocation3], 0  ;;  %s240_s0 = inlined_call_operand.hbm [shape: f32[16,32], index: 0, kind: input, shape index: {}]   ;;  %s241_s1 = inlined_call_operand.hbm [shape: bf16[32,96], index: 1, kind: input, shape index: {}]   ;;  %s242_s2 = inlined_call_operand.hbm [shape: bf16[16,96], index: 2, kind: output, shape index: {}]  }
   0x1   :  { %8 = vsyncpa [#allocation6], 0 }
   0x2   :  { %9 = vsyncpa [#allocation4], 0  ;;  %s14_s11 = sshll.u32 %s240_s0, 4  ;;  %s203_s12 = smov [#allocation2]   ;;  %s15_s11 = int_to_ptr.hbm [resolvable:$true] %s14_s11 }
   0x3   :  { %s16_s13 = sshll.u32 %s203_s12, 4  ;;  %s27_s16 = sshll.u32 %s241_s1, 4  ;;  %s17_s13 = int_to_ptr.vmem [resolvable:$true] %s16_s13  ;;  %s28_s16 = int_to_ptr.hbm [resolvable:$true] %s27_s16 }
   0x4   :  { %s204_s17 = smov 128   ;;  %s205_s18 = smov 8  }
   0x5   :  { %22 = dma.hbm_to_vmem [thread:$0]  %s15_s11, 256, %s17_s13, [#allocation3], %s204_s17, %s204_s17, %s205_s18  }
   0x6   :  { %s206_s19 = smov [#allocation5]   ;;  %s207_s21 = smov 64  }
   0x7   :  { %s29_s20 = sshll.u32 %s206_s19, 4  ;;  %s208_s22 = smov 4   ;;  %s30_s20 = int_to_ptr.vmem [resolvable:$true] %s29_s20 }
   0x8   :  { %35 = dma.hbm_to_vmem [thread:$0]  %s28_s16, 256, %s30_s20, [#allocation6], %s207_s21, %s207_s21, %s208_s22  }
   0x9   :  { %197 = dma.done.wait [#allocation3], 256  }
   0xa   :  { %198 = vsyncadd [#allocation3], 4294967040 }
   0xb   :  { %199 = dma.done.wait [#allocation6], 256  }
   0xc   :  { %200 = vsyncadd [#allocation6], 4294967040  ;;  %v117_v0 = vld [vmem:[#allocation5 + $0x8] sm:$0xff]  ;;  %v116_v1 = vld [vmem:[#allocation5] sm:$0xff]  ;;  %vm64_vm0 = vcmask 261120   ;;  %vm84_vm1 = vcmask 781312  }
   0xd   :  { %74 = vmatpush.bf16.msra.mxu0 %v117_v0  ;;  %v45_v2 = vld [vmem:[#allocation2] sm:$0xff]  ;;  %v46_v3 = vld [vmem:[#allocation2 + $0x8] sm:$0xff]  ;;  %s209_s0 = smov [#allocation7]   ;;  %s93_s25 = sshll.u32 %s242_s2, 4  ;;  %s94_s25 = int_to_ptr.hbm [resolvable:$true] %s93_s25 }
   0xe   :  { %v47_v4 = vpack.c.bf16 %v46_v3, %v45_v2  ;;  %s91_s1 = sshll.u32 %s209_s0, 4  ;;  %s92_s1 = int_to_ptr.vmem [resolvable:$true] %s91_s1 }
  0x11   :  { %75 = vmatpush.bf16.msra.mxu0 %v116_v1 }
  0x14   :  { %115 = vmatmul.msk.bf16.vlgmr.msra.gmra.mxu0 %vm64_vm0, %v47_v4 }
  0x91   :  { %v77_v5 = vpop.f32.mrf.mxu0 }
  0x92   :  { %v82_v6 = vpack.c.bf16 %v77_v5, %v77_v5 }
  0x94   :  { %85 = vst.msk [vmem:[#allocation7] sm:$0xf] %vm84_vm1, %v82_v6 }
  0x99   :  { %v79_v7 = vpop.f32.mrf.mxu0 }
  0x9a   :  { %v83_v8 = vpack.c.bf16 %v79_v7, %v79_v7 }
  0x9c   :  { %86 = vst.msk [vmem:[#allocation7 + $0x4] sm:$0xf] %vm84_vm1, %v83_v8 }
  0x9d   :  { %99 = dma.vmem_to_hbm [thread:$0]  %s92_s1, 128, %s94_s25, [#allocation4], %s207_s21, %s207_s21, %s208_s22  }
  0x9e   :  { %201 = dma.done.wait [#allocation4], 128  }
  0x9f   :  { %202 = vsyncadd [#allocation4], 4294967168 }
  0xa0   :  { %104 = vsyncpa [#allocation3], 1 }
  0xa1   :  { %105 = vsyncpa [#allocation6], 1 }
  0xa2   :  { %106 = vsyncpa [#allocation4], 1 }

</bundles_post_ra>
